<compile_context>
chip_gen: v7x
topology: tpu7x:2x2x1
jax: 0.10.0
libtpu: 0.0.40
codegen_flags: <defaults>
</compile_context>

<pallas_src>
import functools

import jax
import jax.numpy as jnp
from jax import lax
from jax.experimental import pallas as pl
from jax.experimental.pallas import tpu as pltpu


HEAD_PAD = 128  # lane-dense packed head-output width (one full lane block)


def _round_up(x: int, m: int) -> int:
    return ((x + m - 1) // m) * m


def mlp_kernel(x_ref, w1_ref, b1_ref, w2_ref, b2_ref, wh_ref, bh_ref,
               out_ref, *, n_actions: int):
    """One batch tile of the full MLP forward.

    x_ref : (TB, D_in)      bf16
    w*    : bf16 weights (in, out);  b* : f32 biases (1, out)
    wh/bh : fused actor|critic head, zero-padded to HEAD_PAD columns
    out_ref: (TB, HEAD_PAD) f32 packed slab
    """
    x = x_ref[...]

    # fc1 + tanh (activation math in f32)
    h1 = jnp.tanh(
        jnp.dot(x, w1_ref[...], preferred_element_type=jnp.float32) + b1_ref[...]
    )                                                          # (TB, H) f32

    # fc2 + residual add + tanh
    h = jnp.tanh(
        jnp.dot(h1.astype(w2_ref.dtype), w2_ref[...],
                preferred_element_type=jnp.float32)
        + b2_ref[...] + h1
    )                                                          # (TB, H) f32

    # fused actor + critic heads: one lane-dense MXU push
    y = (jnp.dot(h.astype(wh_ref.dtype), wh_ref[...],
                 preferred_element_type=jnp.float32)
         + bh_ref[...])                                        # (TB, HEAD_PAD) f32

    # log-softmax restricted to the actor lanes (0 .. n_actions-1); padded
    # lanes (and the value lane) are excluded from max/sum via masking.
    col = lax.broadcasted_iota(jnp.int32, y.shape, 1)
    is_actor = col < n_actions
    masked = jnp.where(is_actor, y, jnp.float32(-jnp.inf))
    m = jnp.max(masked, axis=-1, keepdims=True)
    p = jnp.where(is_actor, jnp.exp(y - m), 0.0)
    lse = jnp.log(jnp.sum(p, axis=-1, keepdims=True)) + m

    # Packed slab: lanes 0..A-1 -> log-probs, lane A -> critic value (y there
    # already IS the critic output thanks to the fused head), rest garbage.
    out_ref[...] = jnp.where(is_actor, y - lse, y)


def mlp_forward(x, params, *, batch_tile: int = 1024):
    """params: dict with w1,b1,w2,b2,wa,ba,wc,bc; weights stored as (in, out).

    Returns (logp, v) with logp: (B, n_actions) and v: (B, 1), both f32.
    """
    B, D = x.shape
    H = params["w1"].shape[1]
    A = params["wa"].shape[1]
    assert A + 1 <= HEAD_PAD, "n_actions + 1 must fit in one 128-lane block"

    bf16 = jnp.bfloat16

    # Fused + zero-padded head weights/bias (actor | critic | zero padding).
    wh = jnp.zeros((H, HEAD_PAD), jnp.float32)
    wh = wh.at[:, :A].set(params["wa"]).at[:, A:A + 1].set(params["wc"])
    bh = jnp.zeros((1, HEAD_PAD), jnp.float32)
    bh = bh.at[:, :A].set(params["ba"]).at[:, A:A + 1].set(params["bc"])

    # bf16 matmul operands (f32 accumulation in-kernel); biases stay f32.
    x_bf = x.astype(bf16)
    w1 = params["w1"].astype(bf16)
    w2 = params["w2"].astype(bf16)
    wh = wh.astype(bf16)
    b1 = params["b1"].astype(jnp.float32)
    b2 = params["b2"].astype(jnp.float32)

    # Batch tiling: sublane-aligned tile, padded batch, 1-D "parallel" grid.
    # batch_tile=1024 keeps per-step VMEM tiny (< ~2 MiB double-buffered), so
    # it is safe on v5e/v6e (128 MiB VMEM) and v7x (64 MiB) alike.
    TB = min(batch_tile, _round_up(B, 8))
    B_pad = _round_up(B, TB)
    if B_pad != B:
        x_bf = jnp.pad(x_bf, ((0, B_pad - B), (0, 0)))
    grid = (B_pad // TB,)

    const_spec = lambda shape: pl.BlockSpec(shape, lambda i: (0, 0))

    out = pl.pallas_call(
        functools.partial(mlp_kernel, n_actions=A),
        out_shape=jax.ShapeDtypeStruct((B_pad, HEAD_PAD), jnp.float32),
        grid=grid,
        in_specs=[
            pl.BlockSpec((TB, D), lambda i: (i, 0)),   # x: pipelined batch tiles
            const_spec(w1.shape),                      # weights stay VMEM-resident
            const_spec(b1.shape),
            const_spec(w2.shape),
            const_spec(b2.shape),
            const_spec(wh.shape),
            const_spec(bh.shape),
        ],
        out_specs=pl.BlockSpec((TB, HEAD_PAD), lambda i: (i, 0)),
        compiler_params=pltpu.CompilerParams(
            dimension_semantics=("parallel",),         # megacore-shard batch (v7x)
        ),
    )(x_bf, w1, b1, w2, b2, wh, bh)

    logp = out[:B, :A]
    v = out[:B, A:A + 1]
    return logp, v


def init_params(key, num_inputs, hid_size, n_actions):
    """Deterministic init mimicking PyTorch nn.Linear (uniform +/- 1/sqrt(fan_in)).
    Weights are stored transposed: (in_features, out_features)."""
    def linear(k, fan_in, fan_out):
        kw, kb = jax.random.split(k)
        bound = 1.0 / jnp.sqrt(fan_in)
        w = jax.random.uniform(kw, (fan_in, fan_out), jnp.float32, -bound, bound)
        b = jax.random.uniform(kb, (1, fan_out), jnp.float32, -bound, bound)
        return w, b

    k1, k2, k3, k4 = jax.random.split(key, 4)
    w1, b1 = linear(k1, num_inputs, hid_size)
    w2, b2 = linear(k2, hid_size, hid_size)
    wa, ba = linear(k3, hid_size, n_actions)
    wc, bc = linear(k4, hid_size, 1)
    # TODO(synk): actor_target exists in __init__ but is unused in forward(); omitted.
    return dict(w1=w1, b1=b1, w2=w2, b2=b2, wa=wa, ba=ba, wc=wc, bc=bc)


def _reference(x, params):
    """Pure-JAX reference mirroring the kernel's dtype flow (bf16 matmuls,
    f32 accumulation / activations)."""
    bf16 = jnp.bfloat16
    w1 = params["w1"].astype(bf16)
    w2 = params["w2"].astype(bf16)
    wa = params["wa"].astype(bf16)
    wc = params["wc"].astype(bf16)
    h1 = jnp.tanh(jnp.dot(x.astype(bf16), w1,
                          preferred_element_type=jnp.float32) + params["b1"])
    h = jnp.tanh(jnp.dot(h1.astype(bf16), w2,
                         preferred_element_type=jnp.float32)
                 + params["b2"] + h1)
    logits = jnp.dot(h.astype(bf16), wa,
                     preferred_element_type=jnp.float32) + params["ba"]
    v = jnp.dot(h.astype(bf16), wc,
                preferred_element_type=jnp.float32) + params["bc"]
    return jax.nn.log_softmax(logits, axis=-1), v


if __name__ == "__main__":
    # args.hid_size = 32, args.n_actions = 8, num_inputs = 16, batch = 2
    num_inputs, hid_size, n_actions, batch = 16, 32, 8, 2

    key = jax.random.PRNGKey(0)
    kx, kp = jax.random.split(key)
    x = jax.random.normal(kx, (batch, num_inputs), jnp.float32)
    params = init_params(kp, num_inputs, hid_size, n_actions)

    logp, v = mlp_forward(x, params)
    jax.block_until_ready((logp, v))

    ref_logp, ref_v = _reference(x, params)
    assert logp.shape == (batch, n_actions) and v.shape == (batch, 1)
    assert jnp.allclose(logp, ref_logp, atol=2e-3), "log_softmax mismatch"
    assert jnp.allclose(v, ref_v, atol=2e-3), "value head mismatch"

    print("KERNEL_OK")
</pallas_src>

<mosaic_0001>
module attributes {stable_mosaic.version = 11 : i64} {
  func.func @mlp_kernel(%arg0: i32, %arg1: memref<8x16xbf16, #tpu.memory_space<vmem>>, %arg2: memref<16x32xbf16, #tpu.memory_space<vmem>>, %arg3: memref<1x32xf32, #tpu.memory_space<vmem>>, %arg4: memref<32x32xbf16, #tpu.memory_space<vmem>>, %arg5: memref<1x32xf32, #tpu.memory_space<vmem>>, %arg6: memref<32x128xbf16, #tpu.memory_space<vmem>>, %arg7: memref<1x128xf32, #tpu.memory_space<vmem>>, %arg8: memref<8x128xf32, #tpu.memory_space<vmem>>) attributes {dimension_semantics = [#tpu.dimension_semantics<parallel>], iteration_bounds = array<i64: 1>, scalar_prefetch = 0 : i64, scratch_operands = 0 : i64, tpu.core_type = #tpu.core_type<tc>, window_params = [{transform_indices = @transform_0, window_bounds = array<i64: 8, 16>}, {pipeline_mode = #tpu.pipeline_mode<synchronous>, transform_indices = @transform_1, window_bounds = array<i64: 16, 32>}, {pipeline_mode = #tpu.pipeline_mode<synchronous>, transform_indices = @transform_2, window_bounds = array<i64: 1, 32>}, {pipeline_mode = #tpu.pipeline_mode<synchronous>, transform_indices = @transform_3, window_bounds = array<i64: 32, 32>}, {pipeline_mode = #tpu.pipeline_mode<synchronous>, transform_indices = @transform_4, window_bounds = array<i64: 1, 32>}, {pipeline_mode = #tpu.pipeline_mode<synchronous>, transform_indices = @transform_5, window_bounds = array<i64: 32, 128>}, {pipeline_mode = #tpu.pipeline_mode<synchronous>, transform_indices = @transform_6, window_bounds = array<i64: 1, 128>}, {transform_indices = @transform_7, window_bounds = array<i64: 8, 128>}]} {
    %c0 = arith.constant 0 : index
    %c0_0 = arith.constant 0 : index
    %0 = vector.load %arg1[%c0, %c0_0] : memref<8x16xbf16, #tpu.memory_space<vmem>>, vector<8x16xbf16>
    %c0_1 = arith.constant 0 : index
    %c0_2 = arith.constant 0 : index
    %1 = vector.load %arg2[%c0_1, %c0_2] : memref<16x32xbf16, #tpu.memory_space<vmem>>, vector<16x32xbf16>
    %cst = arith.constant dense<0.000000e+00> : vector<8x32xf32>
    %2 = tpu.matmul %0, %1, %cst {dimension_numbers = #tpu.dot_dimension_numbers<[1], [0], [0], [1], [0, 0, 1, 1], [], []>} : vector<8x16xbf16>, vector<16x32xbf16>, vector<8x32xf32> -> vector<8x32xf32>
    %c0_3 = arith.constant 0 : index
    %c0_4 = arith.constant 0 : index
    %3 = vector.load %arg3[%c0_3, %c0_4] : memref<1x32xf32, #tpu.memory_space<vmem>>, vector<1x32xf32>
    %4 = vector.broadcast %3 : vector<1x32xf32> to vector<8x32xf32>
    %5 = arith.addf %2, %4 : vector<8x32xf32>
    %6 = math.tanh %5 : vector<8x32xf32>
    %7 = arith.truncf %6 : vector<8x32xf32> to vector<8x32xbf16>
    %c0_5 = arith.constant 0 : index
    %c0_6 = arith.constant 0 : index
    %8 = vector.load %arg4[%c0_5, %c0_6] : memref<32x32xbf16, #tpu.memory_space<vmem>>, vector<32x32xbf16>
    %cst_7 = arith.constant dense<0.000000e+00> : vector<8x32xf32>
    %9 = tpu.matmul %7, %8, %cst_7 {dimension_numbers = #tpu.dot_dimension_numbers<[1], [0], [0], [1], [0, 0, 1, 1], [], []>} : vector<8x32xbf16>, vector<32x32xbf16>, vector<8x32xf32> -> vector<8x32xf32>
    %c0_8 = arith.constant 0 : index
    %c0_9 = arith.constant 0 : index
    %10 = vector.load %arg5[%c0_8, %c0_9] : memref<1x32xf32, #tpu.memory_space<vmem>>, vector<1x32xf32>
    %11 = vector.broadcast %10 : vector<1x32xf32> to vector<8x32xf32>
    %12 = arith.addf %9, %11 : vector<8x32xf32>
    %13 = arith.addf %12, %6 : vector<8x32xf32>
    %14 = math.tanh %13 : vector<8x32xf32>
    %15 = arith.truncf %14 : vector<8x32xf32> to vector<8x32xbf16>
    %c0_10 = arith.constant 0 : index
    %c0_11 = arith.constant 0 : index
    %16 = vector.load %arg6[%c0_10, %c0_11] : memref<32x128xbf16, #tpu.memory_space<vmem>>, vector<32x128xbf16>
    %cst_12 = arith.constant dense<0.000000e+00> : vector<8x128xf32>
    %17 = tpu.matmul %15, %16, %cst_12 {dimension_numbers = #tpu.dot_dimension_numbers<[1], [0], [0], [1], [0, 0, 1, 1], [], []>} : vector<8x32xbf16>, vector<32x128xbf16>, vector<8x128xf32> -> vector<8x128xf32>
    %c0_13 = arith.constant 0 : index
    %c0_14 = arith.constant 0 : index
    %18 = vector.load %arg7[%c0_13, %c0_14] : memref<1x128xf32, #tpu.memory_space<vmem>>, vector<1x128xf32>
    %19 = vector.broadcast %18 : vector<1x128xf32> to vector<8x128xf32>
    %20 = arith.addf %17, %19 : vector<8x128xf32>
    %21 = tpu.iota {dimensions = array<i32: 1>} : vector<8x128xi32>
    %c8_i32 = arith.constant 8 : i32
    %22 = vector.broadcast %c8_i32 : i32 to vector<8x128xi32>
    %23 = arith.cmpi slt, %21, %22 : vector<8x128xi32>
    %cst_15 = arith.constant 0xFF800000 : f32
    %24 = vector.broadcast %cst_15 : f32 to vector<8x128xf32>
    %25 = arith.select %23, %20, %24 : vector<8x128xi1>, vector<8x128xf32>
    %cst_16 = arith.constant dense<0xFF800000> : vector<8xf32>
    %26 = vector.multi_reduction <maximumf>, %25, %cst_16 [1] : vector<8x128xf32> to vector<8xf32>
    %27 = vector.shape_cast %26 : vector<8xf32> to vector<8x1xf32>
    %28 = vector.broadcast %27 : vector<8x1xf32> to vector<8x128xf32>
    %29 = arith.subf %20, %28 : vector<8x128xf32>
    %30 = math.exp %29 : vector<8x128xf32>
    %cst_17 = arith.constant 0.000000e+00 : f32
    %31 = vector.broadcast %cst_17 : f32 to vector<8x128xf32>
    %32 = arith.select %23, %30, %31 : vector<8x128xi1>, vector<8x128xf32>
    %cst_18 = arith.constant dense<0.000000e+00> : vector<8xf32>
    %33 = vector.multi_reduction <add>, %32, %cst_18 [1] : vector<8x128xf32> to vector<8xf32>
    %34 = vector.shape_cast %33 : vector<8xf32> to vector<8x1xf32>
    %35 = math.log %34 : vector<8x1xf32>
    %36 = arith.addf %35, %27 : vector<8x1xf32>
    %37 = vector.broadcast %36 : vector<8x1xf32> to vector<8x128xf32>
    %38 = arith.subf %20, %37 : vector<8x128xf32>
    %39 = arith.select %23, %38, %20 : vector<8x128xi1>, vector<8x128xf32>
    %c0_19 = arith.constant 0 : index
    %c0_20 = arith.constant 0 : index
    %40 = vector.load %arg8[%c0_19, %c0_20] : memref<8x128xf32, #tpu.memory_space<vmem>>, vector<8x128xf32>
    tpu.vector_store %arg8[%c0_19, %c0_20], %39 {strides = array<i32>} : memref<8x128xf32, #tpu.memory_space<vmem>>, vector<8x128xf32>,
    return
  }
  func.func @transform_0(%arg0: i32) -> (i32, i32) {
    %c0_i32 = arith.constant 0 : i32
    %c0_i32_0 = arith.constant 0 : i32
    return %arg0, %c0_i32 : i32, i32
  }
  func.func @transform_1(%arg0: i32) -> (i32, i32) {
    %c0_i32 = arith.constant 0 : i32
    %c0_i32_0 = arith.constant 0 : i32
    %c0_i32_1 = arith.constant 0 : i32
    return %c0_i32, %c0_i32_0 : i32, i32
  }
  func.func @transform_2(%arg0: i32) -> (i32, i32) {
    %c0_i32 = arith.constant 0 : i32
    %c0_i32_0 = arith.constant 0 : i32
    %c0_i32_1 = arith.constant 0 : i32
    return %c0_i32, %c0_i32_0 : i32, i32
  }
  func.func @transform_3(%arg0: i32) -> (i32, i32) {
    %c0_i32 = arith.constant 0 : i32
    %c0_i32_0 = arith.constant 0 : i32
    %c0_i32_1 = arith.constant 0 : i32
    return %c0_i32, %c0_i32_0 : i32, i32
  }
  func.func @transform_4(%arg0: i32) -> (i32, i32) {
    %c0_i32 = arith.constant 0 : i32
    %c0_i32_0 = arith.constant 0 : i32
    %c0_i32_1 = arith.constant 0 : i32
    return %c0_i32, %c0_i32_0 : i32, i32
  }
  func.func @transform_5(%arg0: i32) -> (i32, i32) {
    %c0_i32 = arith.constant 0 : i32
    %c0_i32_0 = arith.constant 0 : i32
    %c0_i32_1 = arith.constant 0 : i32
    return %c0_i32, %c0_i32_0 : i32, i32
  }
  func.func @transform_6(%arg0: i32) -> (i32, i32) {
    %c0_i32 = arith.constant 0 : i32
    %c0_i32_0 = arith.constant 0 : i32
    %c0_i32_1 = arith.constant 0 : i32
    return %c0_i32, %c0_i32_0 : i32, i32
  }
  func.func @transform_7(%arg0: i32) -> (i32, i32) {
    %c0_i32 = arith.constant 0 : i32
    %c0_i32_0 = arith.constant 0 : i32
    return %arg0, %c0_i32 : i32, i32
  }
}

</mosaic_0001>

<bundles_post_ra>
// kernel: tpu_custom_call.1
= control target key start
LH: loop header
LB: loop body
LE: loop exit
PB: predicated region body
PF: predicated region fallthrough
CT: control target
= control target key end

     0   :  { %12 = vsyncpa [#allocation3], 0  ;;  %s577_s0 = inlined_call_operand.hbm [shape: bf16[8,16], index: 0, kind: input, shape index: {}]   ;;  %s578_s1 = inlined_call_operand.hbm [shape: bf16[16,32], index: 1, kind: input, shape index: {}]   ;;  %s579_s2 = inlined_call_operand.vmem [shape: f32[1,32], index: 2, kind: input, shape index: {}]   ;;  %s580_s3 = inlined_call_operand.hbm [shape: bf16[32,32], index: 3, kind: input, shape index: {}]   ;;  %s581_s4 = inlined_call_operand.vmem [shape: f32[1,32], index: 4, kind: input, shape index: {}]   ;;  %s582_s5 = inlined_call_operand.vmem [shape: bf16[32,128], index: 5, kind: input, shape index: {}]   ;;  %s583_s6 = inlined_call_operand.vmem [shape: f32[1,128], index: 6, kind: input, shape index: {}]   ;;  %s584_s7 = inlined_call_operand.hbm [shape: f32[8,128], index: 7, kind: output, shape index: {}]  }
   0x1   :  { %13 = vsyncpa [#allocation6], 0 }
   0x2   :  { %14 = vsyncpa [#allocation4], 0  ;;  %s455_s24 = smov [#allocation5]   ;;  %s361_s28 = scalar_lea.hbm %s578_s1, 128 }
   0x3   :  { %s30_s25 = sshll.u32 %s455_s24, 4  ;;  %p362_p0 = scmp.ne.s32.totalorder %s578_s1, %s361_s28  ;;  %s31_s25 = int_to_ptr.vmem [resolvable:$true] %s30_s25 }
   0x4   :  { %p365_p1 = scmp.lt.u32.totalorder %s361_s28, %s578_s1 }
   0x6   :  { %p367_p2 = pnand %p365_p1, %p362_p0 }
   0x8   :  { %370 = shalt.err (!%p367_p2)
}
   0x9   :  { %s371_s10 = scalar_lea.vmem %s31_s25, 128  ;;  %p376_p4 = scmp.lt.s32.totalorder %s31_s25, %s31_s25 }
   0xa   :  { %p372_p3 = scmp.ne.s32.totalorder %s31_s25, %s371_s10  ;;  %p377_p5 = scmp.lt.s32.totalorder %s371_s10, %s371_s10 }
   0xc   :  { %p378_p6 = por %p377_p5, %p376_p4 }
   0xe   :  { %p379_p7 = pnand %p378_p6, %p372_p3 }
  0x10   :  { %382 = shalt.err (!%p379_p7)
}
  0x11   :  { %s456_s11 = smov 64   ;;  %s457_s12 = smov 4  }
  0x12   :  { %36 = dma.hbm_to_vmem [thread:$0]  %s578_s1, 128, %s31_s25, [#allocation6], %s456_s11, %s456_s11, %s457_s12  }
  0x13   :  { %s458_s15 = smov [#allocation2]   ;;  %s459_s17 = smov [#allocation7]  }
  0x14   :  { %s21_s16 = sshll.u32 %s458_s15, 4  ;;  %s44_s18 = sshll.u32 %s459_s17, 4  ;;  %s22_s16 = int_to_ptr.vmem [resolvable:$true] %s21_s16  ;;  %s45_s18 = int_to_ptr.vmem [resolvable:$true] %s44_s18 }
  0x15   :  { %s383_s21 = scalar_lea.hbm %s577_s0, 64 }
  0x16   :  { %p384_p8 = scmp.ne.s32.totalorder %s577_s0, %s383_s21  ;;  %p387_p9 = scmp.lt.u32.totalorder %s383_s21, %s577_s0 }
  0x18   :  { %p389_p10 = pnand %p387_p9, %p384_p8 }
  0x1a   :  { %392 = shalt.err (!%p389_p10)
}
  0x1b   :  { %s393_s1 = scalar_lea.vmem %s22_s16, 64  ;;  %p398_p12 = scmp.lt.s32.totalorder %s22_s16, %s22_s16 }
  0x1c   :  { %p394_p11 = scmp.ne.s32.totalorder %s22_s16, %s393_s1  ;;  %p399_p13 = scmp.lt.s32.totalorder %s393_s1, %s393_s1 }
  0x1e   :  { %p400_p0 = por %p399_p13, %p398_p12 }
  0x20   :  { %p401_p1 = pnand %p400_p0, %p394_p11 }
  0x22   :  { %404 = shalt.err (!%p401_p1)
}
  0x23   :  { %24 = dma.hbm_to_vmem [thread:$0]  %s577_s0, 64, %s22_s16, [#allocation3]  }
  0x24   :  { %s405_s30 = scalar_lea.hbm %s580_s3, 256 }
  0x25   :  { %p406_p2 = scmp.ne.s32.totalorder %s580_s3, %s405_s30  ;;  %p409_p3 = scmp.lt.u32.totalorder %s405_s30, %s580_s3 }
  0x27   :  { %p411_p4 = pnand %p409_p3, %p406_p2 }
  0x29   :  { %414 = shalt.err (!%p411_p4)
}
  0x2a   :  { %s415_s14 = scalar_lea.vmem %s45_s18, 256  ;;  %p420_p6 = scmp.lt.s32.totalorder %s45_s18, %s45_s18 }
  0x2b   :  { %p416_p5 = scmp.ne.s32.totalorder %s45_s18, %s415_s14  ;;  %p421_p7 = scmp.lt.s32.totalorder %s415_s14, %s415_s14 }
  0x2d   :  { %p422_p8 = por %p421_p7, %p420_p6 }
  0x2f   :  { %p423_p9 = pnand %p422_p8, %p416_p5 }
  0x31   :  { %426 = shalt.err (!%p423_p9)
}
  0x32   :  { %50 = dma.hbm_to_vmem [thread:$0]  %s580_s3, 256, %s45_s18, [#allocation6], %s456_s11, %s456_s11, %s457_s12  }
  0x33   :  { %449 = dma.done.wait [#allocation3], 64  }
  0x34   :  { %450 = vsyncadd [#allocation3], 4294967232 }
  0x35   :  { %451 = dma.done.wait [#allocation6], 384  }
  0x36   :  { %452 = vsyncadd [#allocation6], 4294966912  ;;  %v460_v0 = vmov 0.0   ;;  %vm461_vm0 = vmmov 0   ;;  %v348_v1 = vld [vmem:[#allocation5] sm:$0xff]   ;;  %vm83_vm1 = vcmask 130048   ;;  %v265_v24 = vlaneseq }
  0x37   :  { %318 = vmatprep.subr.bf16.mxu0 %v460_v0  ;;  %320 = vmatprep.mubr.msk.bf16.mxu0 %vm461_vm0, %v460_v0  ;;  %v67_v2 = vld [vmem:[#allocation2] sm:$0xf]  ;;  %v349_v3 = vld [vmem:[#allocation7] sm:$0xff]   ;;  %v350_v4 = vld [vmem:[#allocation7 + $0x8] sm:$0xff]   ;;  %vm152_vm2 = vcmask 261120  }
  0x38   :  { %324 = vmatprep.subr.bf16.mxu1 %v460_v0  ;;  %328 = vmatprep.mubr.msk.bf16.mxu1 %vm461_vm0, %v460_v0  ;;  %v299_v5 = vld [vmem:[%s579_s2] ss:$0 sm:$0xff]  ;;  %v352_v14 = vld [vmem:[%s582_s5 + $0x8] sm:$0xff]   ;;  %v266_v25 = vand.u32 127, %v265_v24 }
  0x39   :  { %319 = vmatpush3.bf16.msra.mxu0 %v348_v1  ;;  %325 = vmatpush3.bf16.msra.mxu1 %v349_v3  ;;  %v351_v13 = vld [vmem:[%s582_s5] sm:$0xff]  }
  0x3a   :  { %332 = vmatprep.subr.bf16.mxu0 %v460_v0  ;;  %326 = vmatprep.subr.bf16.mxu1 %v460_v0  ;;  %v302_v15 = vld [vmem:[%s581_s4] ss:$0 sm:$0xff]  ;;  %vm267_vm3 = vcmp.lt.s32.totalorder %v266_v25, 8  ;;  %s462_s4 = smov [#allocation8]  }
  0x3b   :  { %v306_v26 = vld [vmem:[%s583_s6] ss:$0 sm:$0xff]  ;;  %s289_s6 = sshll.u32 %s462_s4, 4  ;;  %s290_s6 = int_to_ptr.vmem [resolvable:$true] %s289_s6 }
  0x3c   :  { %321 = vmatmul.mubr.msk.bf16.vlgmr.msra.gmra.mrb[0].mxu0 %vm83_vm1, %v67_v2  ;;  %s427_s21 = scalar_lea.vmem %s290_s6, 128  ;;  %p432_p11 = scmp.lt.s32.totalorder %s290_s6, %s290_s6 }
  0x3d   :  { %336 = vmatprep.mubr.msk.bf16.mxu0 %vm461_vm0, %v460_v0  ;;  %327 = vmatpush3.bf16.msra.mxu1 %v350_v4  ;;  %p428_p10 = scmp.ne.s32.totalorder %s290_s6, %s427_s21  ;;  %p433_p12 = scmp.lt.s32.totalorder %s427_s21, %s427_s21 }
  0x3e   :  { %333 = vmatpush3.bf16.msra.mxu0 %v351_v13 }
  0x3f   :  { %334 = vmatprep.subr.bf16.mxu0 %v460_v0  ;;  %p434_p13 = por %p433_p12, %p432_p11 }
  0x41   :  { %p435_p0 = pnand %p434_p13, %p428_p10 }
  0x42   :  { %335 = vmatpush3.bf16.msra.mxu0 %v352_v14 }
 0x10f   :  { %v121_v6 = vpop.f32.mrb[0].mxu0 }
 0x110   :  { %v122_v7 = vadd.f32 %v299_v5, %v121_v6  ;;  %v322_v8 = vpop.f32.mrb[1].mxu0 }
 0x111   :  { %v124_v9 = vpop.f32.mrb[2].mxu0 }
 0x112   :  { %353 = vtanh.f32 %v122_v7  ;;  %v323_v10 = vpop.f32.mrb[3].mxu0 }
 0x11c   :  { %v354_v11 = vpop.eup %353 }
 0x11d   :  { %v128_v12 = vpack.c.bf16 %v354_v11, %v354_v11 }
 0x11f   :  { %329 = vmatmul.mubr.msk.bf16.vlgmr.msra.gmra.mrb[0].mxu1 %vm152_vm2, %v128_v12 }
 0x1f2   :  { %v190_v16 = vpop.f32.mrb[0].mxu1 }
 0x1f3   :  { %v191_v17 = vadd.f32 %v302_v15, %v190_v16  ;;  %v330_v18 = vpop.f32.mrb[1].mxu1 }
 0x1f4   :  { %v193_v19 = vpop.f32.mrb[2].mxu1 }
 0x1f5   :  { %v196_v20 = vadd.f32 %v354_v11, %v191_v17  ;;  %v331_v21 = vpop.f32.mrb[3].mxu1 }
 0x1f7   :  { %355 = vtanh.f32 %v196_v20 }
 0x201   :  { %v356_v22 = vpop.eup %355 }
 0x202   :  { %v198_v23 = vpack.c.bf16 %v356_v22, %v356_v22 }
 0x204   :  { %337 = vmatmul.mubr.msk.bf16.vlgmr.msra.gmra.mrb[4].mxu0 %vm152_vm2, %v198_v23 }
 0x2d7   :  { %v259_v27 = vpop.f32.mrb[4].mxu0 }
 0x2d8   :  { %v260_v28 = vadd.f32 %v306_v26, %v259_v27  ;;  %v338_v29 = vpop.f32.mrb[5].mxu0 }
 0x2d9   :  { %v262_v30 = vpop.f32.mrb[6].mxu0 }
 0x2da   :  { %v339_v31 = vpop.f32.mrb[7].mxu0  ;;  %v268_v32 = vsel %vm267_vm3, %v260_v28, -inf }
 0x2db   :  { %269 = vmax.xlane.f32.xlu0 %v268_v32 }
 0x368   :  { %v270_v33 = vpop.xlane.xlu0 %269 }
 0x369   :  { %v271_v34 = vsub.f32 %v260_v28, %v270_v33 }
 0x36b   :  { %v272_v35 = vmul.f32 1.442695, %v271_v34 }
 0x36d   :  { %357 = vpow2.f32 %v272_v35 }
 0x377   :  { %v358_v36 = vpop.eup %357 }
 0x378   :  { %v274_v37 = vsel %vm267_vm3, %v358_v36, 0.0 }
 0x379   :  { %275 = vadd.xlane.f32.xlu0 %v274_v37 }
 0x406   :  { %v276_v38 = vpop.xlane.xlu0 %275 }
 0x407   :  { %359 = vlog2.f32 %v276_v38 }
 0x411   :  { %v360_v39 = vpop.eup %359 }
 0x412   :  { %v278_v40 = vmul.f32 0.6931472, %v360_v39 }
 0x414   :  { %v279_v41 = vadd.f32 %v278_v40, %v270_v33 }
 0x416   :  { %v280_v42 = vsub.f32 %v260_v28, %v279_v41 }
 0x418   :  { %v281_v43 = vsel %vm267_vm3, %v280_v42, %v260_v28 }
 0x419   :  { %282 = vst [vmem:[#allocation8] sm:$0xff] %v281_v43 }
 0x41a   :  { %438 = shalt.err (!%p435_p0)
}
 0x41b   :  { %s439_s24 = scalar_lea.hbm %s584_s7, 128 }
 0x41c   :  { %p440_p1 = scmp.ne.s32.totalorder %s584_s7, %s439_s24  ;;  %p443_p2 = scmp.lt.u32.totalorder %s439_s24, %s584_s7 }
 0x41e   :  { %p445_p3 = pnand %p443_p2, %p440_p1 }
 0x420   :  { %448 = shalt.err (!%p445_p3)
}
 0x421   :  { %292 = dma.vmem_to_hbm [thread:$0]  %s290_s6, 128, %s584_s7, [#allocation4]  }
 0x422   :  { %453 = dma.done.wait [#allocation4], 128  }
 0x423   :  { %454 = vsyncadd [#allocation4], 4294967168 }
 0x424   :  { %296 = vsyncpa [#allocation3], 1 }
 0x425   :  { %297 = vsyncpa [#allocation6], 1 }
 0x426   :  { %298 = vsyncpa [#allocation4], 1 }

</bundles_post_ra>
